<compile_context>
chip_gen: v7x
topology: tpu7x:2x2x1
jax: 0.10.0
libtpu: 0.0.40
codegen_flags: <defaults>
</compile_context>

<pallas_src>
import functools

import jax
import jax.numpy as jnp
from jax import lax
from jax.experimental import pallas as pl
from jax.experimental.pallas import tpu as pltpu

_LANE = 128
_TARGET_BLOCK_BYTES = 2 << 20      # ~2 MiB x blocks: >=85% HBM roofline, fits v7x VMEM
_CHUNK_F32_BYTES = 64 * 1024       # per-inner-chunk f32 working set (bounds live vregs)
_MAX_UNROLL = 8                    # static-unroll threshold for the chunk loop


def _cbn_kernel(L, l_tile, chunk, x_ref, ab_ref, out_ref, sum_ref, sq_ref):
    """One (sample, spatial-tile) block per grid step.  Grid = (N, num_l), both parallel.

    out = x * A + B with A/B precomputed per (n, c) in the wrapper.  Per-block
    channel sum / sum-of-squares go to per-(n, l) partials; the final tiny
    reduction over (n, l) happens in the wrapper.
    """
    l = pl.program_id(1)
    C = x_ref.shape[1]

    a = ab_ref[0, 0]            # (C, 1) fused scale = rsqrt(var+eps) * (gamma+1)
    b = ab_ref[0, 1]            # (C, 1) fused shift = beta - miu * scale

    sum_ref[0, 0] = jnp.zeros_like(sum_ref[0, 0])
    sq_ref[0, 0] = jnp.zeros_like(sq_ref[0, 0])

    n_full = l_tile // chunk
    tail = l_tile - n_full * chunk            # nonzero only when l_tile == L
    ragged = (L % l_tile) != 0                # last spatial tile extends past L
    n_safe = (L % l_tile) // chunk if ragged else n_full

    iota_full = (lax.broadcasted_iota(jnp.int32, (C, chunk), 1)
                 if (ragged and n_full > n_safe) else None)

    def process(off, size, masked):
        # Single fused pass: load chunk once, normalize+store, accumulate stats.
        xc = x_ref[0, :, pl.ds(off, size)].astype(jnp.float32)          # (C, size)
        out_ref[0, :, pl.ds(off, size)] = (xc * a + b).astype(out_ref.dtype)
        if masked:
            # Zero the stats contribution of lanes past L.  Only the last spatial
            # tile can be ragged; for earlier tiles the compare is all-true.
            lim = L - l * l_tile - off
            io = (iota_full if (size == chunk and iota_full is not None)
                  else lax.broadcasted_iota(jnp.int32, (C, size), 1))
            xc = jnp.where(io < lim, xc, 0.0)
        sum_ref[0, 0] = sum_ref[0, 0] + jnp.sum(xc, axis=-1, keepdims=True)
        sq_ref[0, 0] = sq_ref[0, 0] + jnp.sum(xc * xc, axis=-1, keepdims=True)

    def run_range(lo, hi, masked):
        count = hi - lo
        if count <= 0:
            return
        if count <= _MAX_UNROLL:
            for i in range(lo, hi):
                process(i * chunk, chunk, masked)
        else:
            def body(i, carry):
                process(pl.multiple_of(i * chunk, chunk), chunk, masked)
                return carry
            lax.fori_loop(lo, hi, body, 0)

    run_range(0, n_safe, False)         # chunks valid in every tile
    run_range(n_safe, n_full, ragged)   # chunks that may cross L in the last tile
    if tail > 0:
        process(n_full * chunk, tail, ragged)


def _choose_tiles(L, C, itemsize):
    """Pick (l_tile, chunk): HBM block width (lanes) and in-kernel chunk width."""
    c_pad = max(8, -(-C // 8) * 8)
    chunk = max(_LANE, (_CHUNK_F32_BYTES // (4 * c_pad)) // _LANE * _LANE)
    row_bytes = C * itemsize
    if L * row_bytes <= _TARGET_BLOCK_BYTES:
        return L, chunk                          # whole spatial extent, one tile
    lanes = _TARGET_BLOCK_BYTES // row_bytes
    if 512 * row_bytes <= 4 * _TARGET_BLOCK_BYTES:
        lanes = max(lanes, 512)                  # keep per-channel HBM runs >= ~2 KiB
    l_tile = max(chunk, (lanes // chunk) * chunk)
    # TODO(synk): for extremely large C (C*512*itemsize >> 8 MiB) a channel grid
    # axis would be needed to keep blocks small; not required for typical C.
    return min(l_tile, (-(-L // chunk)) * chunk), chunk


def cbn2d_forward(x, gatta, miu, var, momentum=0.1, eps=1e-9, *,
                  l_tile=None, chunk=None):
    """x: (N, C, H, W); gatta: (N, 2*C) or None; miu/var: (C,) running buffers.

    Returns (out_nchw, new_miu, new_var) with the exact forward semantics of the
    PyTorch CBN2D module (including its `momentum*momentum` var update).
    `l_tile` / `chunk` are tuning / testing overrides.
    """
    N, C, H, W = x.shape
    L = H * W
    itemsize = jnp.dtype(x.dtype).itemsize
    x_ncl = x.reshape(N, C, L)                   # native dtype, no extra HBM pass

    auto_l, auto_c = _choose_tiles(L, C, itemsize)
    l_tile = auto_l if l_tile is None else int(l_tile)
    chunk = auto_c if chunk is None else int(chunk)
    num_l = -(-L // l_tile)
    assert l_tile == L or l_tile % _LANE == 0, "l_tile must be lane-aligned or == H*W"
    assert l_tile % chunk == 0 or num_l == 1, "multi-tile l_tile must be a chunk multiple"

    # Fused per-sample scale/shift (tiny (N, C) math, once in the wrapper):
    #   out = (x - miu) * rsqrt(var + eps) * (gamma + 1) + beta = x * A + B
    miu_f = miu.astype(jnp.float32)
    var_f = var.astype(jnp.float32)
    if gatta is None:
        gamma = jnp.zeros((N, C), jnp.float32)
        beta = jnp.zeros((N, C), jnp.float32)
    else:
        gamma = gatta[:, :C].astype(jnp.float32)
        beta = gatta[:, C:2 * C].astype(jnp.float32)
    a = lax.rsqrt(var_f + float(eps))[None, :] * (gamma + 1.0)    # (N, C)
    b = beta - miu_f[None, :] * a                                 # (N, C)
    ab = jnp.stack([a, b], axis=1)[..., None]                     # (N, 2, C, 1)

    kernel = functools.partial(_cbn_kernel, L, l_tile, chunk)

    block_bytes = C * l_tile * itemsize
    vmem_limit = int(min(64 << 20,
                         max(32 << 20, 4 * block_bytes + 8 * C * l_tile + (2 << 20))))

    out_ncl, sum_part, sq_part = pl.pallas_call(
        kernel,
        out_shape=(
            jax.ShapeDtypeStruct((N, C, L), x.dtype),               # native dtype out
            jax.ShapeDtypeStruct((N, num_l, C, 1), jnp.float32),    # channel sums
            jax.ShapeDtypeStruct((N, num_l, C, 1), jnp.float32),    # channel sum-sq
        ),
        grid_spec=pltpu.PrefetchScalarGridSpec(
            num_scalar_prefetch=0,
            grid=(N, num_l),
            in_specs=[
                pl.BlockSpec((1, C, l_tile), lambda n, l: (n, 0, l)),    # x
                pl.BlockSpec((1, 2, C, 1), lambda n, l: (n, 0, 0, 0)),   # fused A/B
            ],
            out_specs=[
                pl.BlockSpec((1, C, l_tile), lambda n, l: (n, 0, l)),    # out
                pl.BlockSpec((1, 1, C, 1), lambda n, l: (n, l, 0, 0)),   # sum partials
                pl.BlockSpec((1, 1, C, 1), lambda n, l: (n, l, 0, 0)),   # sumsq partials
            ],
        ),
        compiler_params=pltpu.CompilerParams(
            dimension_semantics=("parallel", "parallel"),
            vmem_limit_bytes=vmem_limit,
        ),
    )(x_ncl, ab)

    out = out_ncl.reshape(N, C, H, W)

    # Finalize batch statistics (tiny (N, num_l, C, 1) partials).
    total = float(N * L)
    sum_x = jnp.sum(sum_part, axis=(0, 1, 3))     # (C,)
    sum_sq = jnp.sum(sq_part, axis=(0, 1, 3))     # (C,)
    tmp_mean = sum_x / total
    # unbiased variance (torch.var default, ddof=1)
    # TODO(synk): sum-of-squares form can lose precision if |mean| >> std at very
    # large N*H*W; a shifted/Welford accumulation would be more robust.
    tmp_var = (sum_sq - total * tmp_mean * tmp_mean) / (total - 1.0)

    new_miu = momentum * miu_f + (1.0 - momentum) * tmp_mean
    # Reproduces the original module exactly (momentum*momentum, not momentum*var).
    new_var = momentum * momentum + (1.0 - momentum) * tmp_var
    return out, new_miu.astype(miu.dtype), new_var.astype(var.dtype)


def _reference(x, gatta, miu, var, momentum=0.1, eps=1e-9):
    N, C, H, W = x.shape
    xf = x.astype(jnp.float32).reshape(N, C, H * W)
    if gatta is None:
        gamma = jnp.zeros((N, C), jnp.float32)
        beta = jnp.zeros((N, C), jnp.float32)
    else:
        gamma = gatta[:, :C].astype(jnp.float32)
        beta = gatta[:, C:2 * C].astype(jnp.float32)
    miu_f = miu.astype(jnp.float32)
    var_f = var.astype(jnp.float32)
    out = ((xf - miu_f[None, :, None]) / jnp.sqrt(var_f[None, :, None] + eps)
           * (gamma[:, :, None] + 1.0) + beta[:, :, None])
    out = out.reshape(N, C, H, W)
    flat = jnp.transpose(xf, (0, 2, 1)).reshape(-1, C)
    tmp_mean = jnp.mean(flat, axis=0)
    tmp_var = jnp.var(flat, axis=0, ddof=1)
    new_miu = momentum * miu_f + (1.0 - momentum) * tmp_mean
    new_var = momentum * momentum + (1.0 - momentum) * tmp_var
    return out, new_miu, new_var


if __name__ == "__main__":
    key = jax.random.PRNGKey(0)
    momentum = 0.1

    # --- Case 1: default tiling, f32, single spatial tile per sample --------
    N, C, H, W = 2, 4, 16, 16
    k1, k2, key = jax.random.split(key, 3)
    x = jax.random.normal(k1, (N, C, H, W), dtype=jnp.float32)
    gatta = jax.random.normal(k2, (N, 2 * C), dtype=jnp.float32)
    miu = jnp.zeros((C,), jnp.float32)
    var = jnp.ones((C,), jnp.float32)

    out, new_miu, new_var = cbn2d_forward(x, gatta, miu, var, momentum)
    jax.block_until_ready((out, new_miu, new_var))
    r_out, r_miu, r_var = _reference(x, gatta, miu, var, momentum)
    assert jnp.allclose(out, r_out, rtol=1e-5, atol=1e-5)
    assert jnp.allclose(new_miu, r_miu, rtol=1e-5, atol=1e-5)
    assert jnp.allclose(new_var, r_var, rtol=1e-5, atol=1e-5)

    # --- Case 2: bf16 input/output (native-dtype I/O path) ------------------
    x16 = x.astype(jnp.bfloat16)
    out16, miu16, var16 = cbn2d_forward(x16, gatta, miu, var, momentum)
    jax.block_until_ready((out16, miu16, var16))
    r_out16, r_miu16, r_var16 = _reference(x16, gatta, miu, var, momentum)
    assert out16.dtype == jnp.bfloat16
    assert jnp.allclose(out16.astype(jnp.float32), r_out16, rtol=2e-2, atol=2e-2)
    assert jnp.allclose(miu16, r_miu16, rtol=1e-4, atol=1e-4)
    assert jnp.allclose(var16, r_var16, rtol=1e-4, atol=1e-4)

    # --- Case 3: forced small tiles -> multi-tile, ragged last tile, fori ---
    N3, C3, H3, W3 = 2, 8, 47, 80          # L = 3760; l_tile = 2560 -> ragged tile
    k3, k4, k5, key = jax.random.split(key, 4)
    x3 = jax.random.normal(k3, (N3, C3, H3, W3), dtype=jnp.float32)
    gatta3 = jax.random.normal(k4, (N3, 2 * C3), dtype=jnp.float32)
    miu3 = 0.1 * jax.random.normal(k5, (C3,), dtype=jnp.float32)
    var3 = jnp.full((C3,), 1.3, jnp.float32)
    out3, miu3n, var3n = cbn2d_forward(x3, gatta3, miu3, var3, momentum,
                                       l_tile=2560, chunk=128)
    jax.block_until_ready((out3, miu3n, var3n))
    r_out3, r_miu3, r_var3 = _reference(x3, gatta3, miu3, var3, momentum)
    assert jnp.allclose(out3, r_out3, rtol=1e-4, atol=1e-4)
    assert jnp.allclose(miu3n, r_miu3, rtol=1e-4, atol=1e-4)
    assert jnp.allclose(var3n, r_var3, rtol=1e-4, atol=1e-4)

    print("KERNEL_OK")
</pallas_src>

<mosaic_0001>
module attributes {stable_mosaic.version = 11 : i64} {
  func.func @_cbn_kernel(%arg0: i32, %arg1: i32, %arg2: memref<1x4x256xf32, #tpu.memory_space<vmem>>, %arg3: memref<1x2x4x1xf32, #tpu.memory_space<vmem>>, %arg4: memref<1x4x256xf32, #tpu.memory_space<vmem>>, %arg5: memref<1x1x4x1xf32, #tpu.memory_space<vmem>>, %arg6: memref<1x1x4x1xf32, #tpu.memory_space<vmem>>) attributes {dimension_semantics = [#tpu.dimension_semantics<parallel>, #tpu.dimension_semantics<parallel>], iteration_bounds = array<i64: 2, 1>, scalar_prefetch = 0 : i64, scratch_operands = 0 : i64, tpu.core_type = #tpu.core_type<tc>, window_params = [{transform_indices = @transform_0, window_bounds = array<i64: 1, 4, 256>}, {transform_indices = @transform_1, window_bounds = array<i64: 1, 2, 4, 1>}, {transform_indices = @transform_2, window_bounds = array<i64: 1, 4, 256>}, {transform_indices = @transform_3, window_bounds = array<i64: 1, 1, 4, 1>}, {transform_indices = @transform_4, window_bounds = array<i64: 1, 1, 4, 1>}]} {
    %c0 = arith.constant 0 : index
    %c0_0 = arith.constant 0 : index
    %c0_1 = arith.constant 0 : index
    %c0_2 = arith.constant 0 : index
    %0 = vector.load %arg3[%c0, %c0_0, %c0_1, %c0_2] : memref<1x2x4x1xf32, #tpu.memory_space<vmem>>, vector<1x1x4x1xf32>
    %1 = vector.shape_cast %0 : vector<1x1x4x1xf32> to vector<4x1xf32>
    %c0_3 = arith.constant 0 : index
    %c1 = arith.constant 1 : index
    %c0_4 = arith.constant 0 : index
    %c0_5 = arith.constant 0 : index
    %2 = vector.load %arg3[%c0_3, %c1, %c0_4, %c0_5] : memref<1x2x4x1xf32, #tpu.memory_space<vmem>>, vector<1x1x4x1xf32>
    %3 = vector.shape_cast %2 : vector<1x1x4x1xf32> to vector<4x1xf32>
    %cst = arith.constant 0.000000e+00 : f32
    %4 = vector.broadcast %cst : f32 to vector<4x1xf32>
    %c0_6 = arith.constant 0 : index
    %c0_7 = arith.constant 0 : index
    %c0_8 = arith.constant 0 : index
    %c0_9 = arith.constant 0 : index
    %5 = vector.load %arg5[%c0_6, %c0_7, %c0_8, %c0_9] : memref<1x1x4x1xf32, #tpu.memory_space<vmem>>, vector<1x1x4x1xf32>
    %6 = vector.shape_cast %5 : vector<1x1x4x1xf32> to vector<4x1xf32>
    %7 = vector.shape_cast %4 : vector<4x1xf32> to vector<1x1x4x1xf32>
    tpu.vector_store %arg5[%c0_6, %c0_7, %c0_8, %c0_9], %7 {strides = array<i32>} : memref<1x1x4x1xf32, #tpu.memory_space<vmem>>, vector<1x1x4x1xf32>,
    %cst_10 = arith.constant 0.000000e+00 : f32
    %8 = vector.broadcast %cst_10 : f32 to vector<4x1xf32>
    %c0_11 = arith.constant 0 : index
    %c0_12 = arith.constant 0 : index
    %c0_13 = arith.constant 0 : index
    %c0_14 = arith.constant 0 : index
    %9 = vector.load %arg6[%c0_11, %c0_12, %c0_13, %c0_14] : memref<1x1x4x1xf32, #tpu.memory_space<vmem>>, vector<1x1x4x1xf32>
    %10 = vector.shape_cast %9 : vector<1x1x4x1xf32> to vector<4x1xf32>
    %11 = vector.shape_cast %8 : vector<4x1xf32> to vector<1x1x4x1xf32>
    tpu.vector_store %arg6[%c0_11, %c0_12, %c0_13, %c0_14], %11 {strides = array<i32>} : memref<1x1x4x1xf32, #tpu.memory_space<vmem>>, vector<1x1x4x1xf32>,
    %c0_15 = arith.constant 0 : index
    %c0_16 = arith.constant 0 : index
    %c0_17 = arith.constant 0 : index
    %12 = vector.load %arg2[%c0_15, %c0_16, %c0_17] : memref<1x4x256xf32, #tpu.memory_space<vmem>>, vector<1x4x256xf32>
    %13 = vector.shape_cast %12 : vector<1x4x256xf32> to vector<4x256xf32>
    %14 = vector.broadcast %1 : vector<4x1xf32> to vector<4x256xf32>
    %15 = arith.mulf %13, %14 : vector<4x256xf32>
    %16 = vector.broadcast %3 : vector<4x1xf32> to vector<4x256xf32>
    %17 = arith.addf %15, %16 : vector<4x256xf32>
    %c0_18 = arith.constant 0 : index
    %c0_19 = arith.constant 0 : index
    %c0_20 = arith.constant 0 : index
    %18 = vector.load %arg4[%c0_18, %c0_19, %c0_20] : memref<1x4x256xf32, #tpu.memory_space<vmem>>, vector<1x4x256xf32>
    %19 = vector.shape_cast %18 : vector<1x4x256xf32> to vector<4x256xf32>
    %20 = vector.shape_cast %17 : vector<4x256xf32> to vector<1x4x256xf32>
    tpu.vector_store %arg4[%c0_18, %c0_19, %c0_20], %20 {strides = array<i32>} : memref<1x4x256xf32, #tpu.memory_space<vmem>>, vector<1x4x256xf32>,
    %c0_21 = arith.constant 0 : index
    %c0_22 = arith.constant 0 : index
    %c0_23 = arith.constant 0 : index
    %c0_24 = arith.constant 0 : index
    %21 = vector.load %arg5[%c0_21, %c0_22, %c0_23, %c0_24] : memref<1x1x4x1xf32, #tpu.memory_space<vmem>>, vector<1x1x4x1xf32>
    %22 = vector.shape_cast %21 : vector<1x1x4x1xf32> to vector<4x1xf32>
    %cst_25 = arith.constant dense<0.000000e+00> : vector<4xf32>
    %23 = vector.multi_reduction <add>, %13, %cst_25 [1] : vector<4x256xf32> to vector<4xf32>
    %24 = vector.shape_cast %23 : vector<4xf32> to vector<4x1xf32>
    %25 = arith.addf %22, %24 : vector<4x1xf32>
    %c0_26 = arith.constant 0 : index
    %c0_27 = arith.constant 0 : index
    %c0_28 = arith.constant 0 : index
    %c0_29 = arith.constant 0 : index
    %26 = vector.load %arg5[%c0_26, %c0_27, %c0_28, %c0_29] : memref<1x1x4x1xf32, #tpu.memory_space<vmem>>, vector<1x1x4x1xf32>
    %27 = vector.shape_cast %26 : vector<1x1x4x1xf32> to vector<4x1xf32>
    %28 = vector.shape_cast %25 : vector<4x1xf32> to vector<1x1x4x1xf32>
    tpu.vector_store %arg5[%c0_26, %c0_27, %c0_28, %c0_29], %28 {strides = array<i32>} : memref<1x1x4x1xf32, #tpu.memory_space<vmem>>, vector<1x1x4x1xf32>,
    %c0_30 = arith.constant 0 : index
    %c0_31 = arith.constant 0 : index
    %c0_32 = arith.constant 0 : index
    %c0_33 = arith.constant 0 : index
    %29 = vector.load %arg6[%c0_30, %c0_31, %c0_32, %c0_33] : memref<1x1x4x1xf32, #tpu.memory_space<vmem>>, vector<1x1x4x1xf32>
    %30 = vector.shape_cast %29 : vector<1x1x4x1xf32> to vector<4x1xf32>
    %31 = arith.mulf %13, %13 : vector<4x256xf32>
    %cst_34 = arith.constant dense<0.000000e+00> : vector<4xf32>
    %32 = vector.multi_reduction <add>, %31, %cst_34 [1] : vector<4x256xf32> to vector<4xf32>
    %33 = vector.shape_cast %32 : vector<4xf32> to vector<4x1xf32>
    %34 = arith.addf %30, %33 : vector<4x1xf32>
    %c0_35 = arith.constant 0 : index
    %c0_36 = arith.constant 0 : index
    %c0_37 = arith.constant 0 : index
    %c0_38 = arith.constant 0 : index
    %35 = vector.load %arg6[%c0_35, %c0_36, %c0_37, %c0_38] : memref<1x1x4x1xf32, #tpu.memory_space<vmem>>, vector<1x1x4x1xf32>
    %36 = vector.shape_cast %35 : vector<1x1x4x1xf32> to vector<4x1xf32>
    %37 = vector.shape_cast %34 : vector<4x1xf32> to vector<1x1x4x1xf32>
    tpu.vector_store %arg6[%c0_35, %c0_36, %c0_37, %c0_38], %37 {strides = array<i32>} : memref<1x1x4x1xf32, #tpu.memory_space<vmem>>, vector<1x1x4x1xf32>,
    return
  }
  func.func @transform_0(%arg0: i32, %arg1: i32) -> (i32, i32, i32) {
    %c0_i32 = arith.constant 0 : i32
    %c0_i32_0 = arith.constant 0 : i32
    return %arg0, %c0_i32, %arg1 : i32, i32, i32
  }
  func.func @transform_1(%arg0: i32, %arg1: i32) -> (i32, i32, i32, i32) {
    %c0_i32 = arith.constant 0 : i32
    %c0_i32_0 = arith.constant 0 : i32
    %c0_i32_1 = arith.constant 0 : i32
    %c0_i32_2 = arith.constant 0 : i32
    return %arg0, %c0_i32, %c0_i32_0, %c0_i32_1 : i32, i32, i32, i32
  }
  func.func @transform_2(%arg0: i32, %arg1: i32) -> (i32, i32, i32) {
    %c0_i32 = arith.constant 0 : i32
    %c0_i32_0 = arith.constant 0 : i32
    return %arg0, %c0_i32, %arg1 : i32, i32, i32
  }
  func.func @transform_3(%arg0: i32, %arg1: i32) -> (i32, i32, i32, i32) {
    %c0_i32 = arith.constant 0 : i32
    %c0_i32_0 = arith.constant 0 : i32
    %c0_i32_1 = arith.constant 0 : i32
    return %arg0, %arg1, %c0_i32, %c0_i32_0 : i32, i32, i32, i32
  }
  func.func @transform_4(%arg0: i32, %arg1: i32) -> (i32, i32, i32, i32) {
    %c0_i32 = arith.constant 0 : i32
    %c0_i32_0 = arith.constant 0 : i32
    %c0_i32_1 = arith.constant 0 : i32
    return %arg0, %arg1, %c0_i32, %c0_i32_0 : i32, i32, i32, i32
  }
}

</mosaic_0001>

<bundles_post_ra>
// kernel: tpu_custom_call.1
= control target key start
LH: loop header
LB: loop body
LE: loop exit
PB: predicated region body
PF: predicated region fallthrough
CT: control target
= control target key end

     0   :  { %10 = vsyncpa [#allocation3], 0  ;;  %s855_s0 = inlined_call_operand.vmem [shape: f32[2,4,256], index: 0, kind: input, shape index: {}]   ;;  %s856_s1 = inlined_call_operand.vmem [shape: f32[2,2,4,1], index: 1, kind: input, shape index: {}]   ;;  %s857_s2 = inlined_call_operand.hbm [shape: f32[2,4,256], index: 2, kind: output, shape index: {0}]   ;;  %s858_s3 = inlined_call_operand.vmem [shape: f32[2,1,4,1], index: 3, kind: output, shape index: {1}]   ;;  %s859_s4 = inlined_call_operand.vmem [shape: f32[2,1,4,1], index: 4, kind: output, shape index: {2}]  }
   0x1   :  { %12 = vsyncpa [#allocation3 + $0x1], 0  ;;  %s720_s15 = smov 0   ;;  %s722_s16 = smov 0  }
   0x2   :  { %s724_s17 = smov 0   ;;  %s726_s18 = smov 0  }
   0x3   :  { %s728_s19 = smov 0   ;;  %s730_s20 = smov 0  }
   0x4 LB: > { %s529_s21 = sadd.s32 4294967295, %s689_s20   ;;  %s530_s22 = sadd.s32 4294967294, %s689_s20   ;;  %s689_s20 = sphi %s730_s20, %s18_s20   ;;  %s685_s19 = sphi %s728_s19, %s866_s19   ;;  %s681_s18 = sphi %s726_s18, %s865_s18   ;;  %s677_s17 = sphi %s724_s17, %s864_s17   ;;  %s673_s16 = sphi %s722_s16, %s863_s16   ;;  %s669_s15 = sphi %s720_s15, %s862_s15  }
   0x5   : > { %s30_s23 = sadd.s32 1, %s685_s19  ;;  %s93_s24 = sadd.s32 1, %s677_s17 }
   0x6   : > { %p32_p0 = scmp.ge.s32.totalorder %s30_s23, 2  ;;  %p103_p1 = scmp.ne.s32.totalorder %s677_s17, %s673_s16 }
   0x7   : > { %p104_p2 = scmp.eq.s32.totalorder %s529_s21, 1  ;;  %p109_p3 = scmp.ne.s32.totalorder %s673_s16, %s669_s15 }
   0x8   : > { %s868_s23 = smov (%p32_p0, %s30_s23), 0  ;;  %p110_p5 = scmp.eq.s32.totalorder %s530_s22, 1 }
   0x9   : > { %p760_p4 = por %p104_p2, %p103_p1  ;;  %s88_s26 = ssub.s32 %s685_s19, %s868_s23 }
   0xa   : > { %p533_p6 = scmp.ge.s32.totalorder %s689_s20, 1  ;;  %p91_p7 = scmp.eq.s32.totalorder %s88_s26, 0 }
   0xb   : > { %p767_p8 = por %p110_p5, %p109_p3  ;;  %p205_p9 = scmp.lt.s32.totalorder %s689_s20, 3 }
   0xc   : > { %s773_s28 = scalar_select %p91_p7, %s677_s17, %s93_s24  }
   0xd   : > { %p206_p10 = pnand %p533_p6, %p205_p9 }
   0xe   : > { %p255_p11 = scmp.lt.s32.totalorder (!%p206_p10), %s681_s18, 1  ;;  %v691_v0 = vmov (!%p206_p10), 0   ;;  %vm322_vm0 = vcmask (!%p206_p10), 1043456   ;;  %vm287_vm1 = vcmask (!%p206_p10), 3072   ;;  %v692_v13 = vmov (!%p206_p10), 0.0   ;;  %s233_s26 = sand.u32 (!%p206_p10), 1, %s673_s16  }
   0xf   : > { %209 = sbr.rel (%p206_p10) target bundleno = 185 (0xb9), region = 28  ;;  %608 = vset.pattern.permute.xlu1 (!%p206_p10), %v691_v0  ;;  %609 = vset.pattern.permute.xlu0 (!%p206_p10), %v691_v0  ;;  %v693_v14 = vmov (!%p206_p10), 839922192   ;;  %v298_v16 = vlaneseq (!%p206_p10) }
  0x10   : > { %v296_v15 = vunpack.c.l.s4 (!%p206_p10), %v693_v14 }
  0x11   : > { %v299_v18 = vshrl.u32 (!%p206_p10), %v298_v16, 7 }
  0x12   : > { %v297_v17 = vunpack.c.0.s8 (!%p206_p10), %v296_v15 }
  0x14   : > { %v300_v19 = vsub.s32 (!%p206_p10), %v297_v17, %v299_v18 }
  0x16   : > { %s256_s29 = scalar_select %p255_p11, %s681_s18, 1 }
  0x18   : > { %s547_s30 = sshll.u32 %s256_s29, 3  ;;  %s539_s11 = sshll.u32 %s256_s29, 2 }
  0x19   : > { %s262_s7 = scalar_lea.vmem %s855_s0, %s547_s30  ;;  %s268_s10 = scalar_lea.vmem %s856_s1, %s547_s30 }
  0x1a   : > { %v290_v1 = vld [vmem:[%s262_s7] sm:$0xff]  ;;  %s786_s14 = scalar_lea.vmem %s858_s3, %s539_s11  ;;  %s793_s24 = scalar_lea.vmem %s859_s4, %s539_s11 }
  0x1b   : > { %v284_v2 = vld [vmem:[%s268_s10] sm:$0xf]  ;;  %v320_v3 = vcombine.high %v290_v1, %v290_v1  ;;  %v323_v4 = vsel %vm322_vm0, %v290_v1, 0.0  ;;  %v331_v5 = vmul.f32 %v290_v1, %v290_v1  ;;  %v541_v6 = vld [vmem:[%s268_s10 + $0x4] sm:$0xf]  ;;  %s534_s29 = sshll.u32 %s233_s26, 3 }
  0x1c   : > { %293 = vperm.xlu1 %608, %v284_v2   ;;  %288 = vst.msk [vmem:[%s786_s14] sm:$0xf] %vm287_vm1, %v692_v13  ;;  %289 = vst.msk [vmem:[%s793_s24] sm:$0xf] %vm287_vm1, %v692_v13  ;;  %s549_s30 = sshll.u32 %s681_s18, 7  ;;  %s235_s5 = scalar_lea.vmem [#allocation2], %s534_s29 }
  0x1d   : > { %v324_v7 = vsel %vm322_vm0, %v320_v3, 0.0  ;;  %v333_v8 = vcombine.high %v331_v5, %v331_v5  ;;  %v335_v9 = vsel %vm322_vm0, %v331_v5, 0.0  ;;  %s373_s6 = sshll.u32 %s235_s5, 4  ;;  %s802_s9 = scalar_lea.hbm %s857_s2, %s549_s30  ;;  %s804_s6 = int_to_ptr.vmem [resolvable:$true] %s373_s6 }
  0x1e   : > { %v325_v10 = vadd.f32 %v324_v7, %v323_v4  ;;  %s343_s10 = scalar_lea.sflag [#allocation3], %s233_s26  ;;  %s611_s11 = scalar_lea.vmem %s804_s6, 128 }
  0x1f   : > { %v336_v11 = vsel %vm322_vm0, %v333_v8, 0.0  ;;  %p612_p12 = scmp.ne.s32.totalorder %s804_s6, %s611_s11  ;;  %s694_s18 = smov [#allocation2]  }
  0x20   : > { %306 = vperm.xlu1 %608, %v541_v6   ;;  %326 = vadd.xlane.f32.xlu0 %v325_v10  ;;  %v337_v12 = vadd.f32 %v336_v11, %v335_v9  ;;  %s615_s12 = sshll.u32 %s694_s18, 4  ;;  %s616_s12 = int_to_ptr.vmem [resolvable:$false] %s615_s12 }
  0x21   : > { %p613_p13 = pnand %p612_p12, %p760_p4  ;;  %s617_s13 = scalar_lea.vmem %s616_s12, 256 }
  0x22   : > { %p618_p1 = scmp.lt.s32.totalorder %s804_s6, %s616_s12  ;;  %p619_p2 = scmp.lt.s32.totalorder %s617_s13, %s611_s11 }
  0x23   : > { %p614_p0 = pneg %p613_p13 }
  0x24   : > { %338 = vadd.xlane.f32.xlu0 %v337_v12  ;;  %p620_p3 = por %p619_p2, %p618_p1 }
  0x26   : > { %p621_p5 = pnand %p620_p3, %p614_p0 }
  0x9b   : > { %v294_v20 = vpop.permute.xlu1 %293 }
  0x9c   : > { %v301_v21 = vrot.slane %v294_v20, %v300_v19 }
  0x9e   : > { %v303_v22 = vmul.f32 %v301_v21, %v290_v1 }
  0x9f   : > { %v307_v23 = vpop.permute.xlu1 %306 }
  0xa0   : > { %v314_v24 = vrot.slane %v307_v23, %v300_v19 }
  0xa2   : > { %v316_v25 = vadd.f32 %v314_v24, %v303_v22 }
  0xa4   : > { %317 = vst [vmem:[%s235_s5] sm:$0xff] %v316_v25 }
  0xa5   : > { %624 = shalt.err (!%p621_p5)
}
  0xa6   : > { %s625_s21 = scalar_lea.hbm %s802_s9, 128  ;;  %s629_s29 = scalar_lea.hbm %s857_s2, 256 }
  0xa7   : > { %p626_p6 = scmp.ne.s32.totalorder %s802_s9, %s625_s21  ;;  %p630_p10 = scmp.lt.u32.totalorder %s802_s9, %s857_s2 }
  0xa8   : > { %p631_p11 = scmp.lt.u32.totalorder %s629_s29, %s625_s21  ;;  %p633_p13 = scmp.lt.u32.totalorder %s625_s21, %s802_s9 }
  0xa9   : > { %p627_p7 = pnand %p626_p6, %p760_p4 }
  0xaa   : > { %p632_p12 = por %p631_p11, %p630_p10 }
  0xab   : > { %p628_p9 = pneg %p627_p7 }
  0xac   : > { %p634_p0 = por %p633_p13, %p632_p12 }
  0xae   : > { %p635_p1 = pnand %p634_p0, %p628_p9 }
  0xb0   : > { %638 = shalt.err (!%p635_p1)
}
  0xb1   : > { %550 = dma.vmem_to_hbm [thread:$0]  (%p760_p4), %s804_s6, 128, %s802_s9, %s343_s10   ;;  %v318_v26 = vld [vmem:[%s786_s14] sm:$0xf]  ;;  %v327_v27 = vpop.xlane.xlu0 %326 }
  0xb2   : > { %v328_v28 = vadd.f32 %v327_v27, %v318_v26  ;;  %v330_v29 = vld [vmem:[%s793_s24] sm:$0xf] }
  0xb4   : > { %329 = vst.msk [vmem:[%s786_s14] sm:$0xf] %vm287_vm1, %v328_v28 }
  0xb5   : > { %v339_v30 = vpop.xlane.xlu0 %338 }
  0xb6   : > { %v340_v31 = vadd.f32 %v339_v30, %v330_v29 }
  0xb8   : > { %341 = vst.msk [vmem:[%s793_s24] sm:$0xf] %vm287_vm1, %v340_v31 }
  0xb9 PF: > { %p556_p2 = scmp.ge.s32.totalorder %s689_s20, 2  ;;  %s391_s25 = sand.u32 1, %s669_s15  }
  0xba   : > { %s392_s7 = scalar_lea.sflag [#allocation3], %s391_s25 }
  0xbb   : > { %p553_p3 = pnand %p556_p2, %p767_p8 }
  0xbd   : > { %664 = dma.done.wait (!%p553_p3), %s392_s7, 128  }
  0xbe   : > { %666 = vsyncadd (!%p553_p3), %s392_s7, 4294967168  ;;  %s18_s20 = sadd.s32 1, %s689_s20   ;;  %s862_s15 = smov %s673_s16 }
  0xbf   : > { %p15_p4 = scmp.ge.s32.totalorder %s18_s20, 4   ;;  %s863_s16 = smov %s677_s17 }
  0xc0   : > { %s864_s17 = smov %s773_s28  ;;  %s865_s18 = smov %s685_s19 }
  0xc1   : > { %s866_s19 = smov %s868_s23  ;;  %17 = sbr.rel (!%p15_p4) target bundleno = 4 (0x4), region = 91 }
  0xc8   :  { %417 = vsyncpa [#allocation3], 1 }
  0xc9   :  { %419 = vsyncpa [#allocation3 + $0x1], 1 }

</bundles_post_ra>
